<compile_context>
chip_gen: v6e
topology: v6e:2x2x1
jax: 0.10.0
libtpu: 0.0.40
codegen_flags: <defaults>
</compile_context>

<pallas_src>
import math
import jax
import jax.numpy as jnp
from jax.experimental import pallas as pl
from jax.experimental.pallas import tpu as pltpu


def _round_up(x, m):
    return ((x + m - 1) // m) * m


# Conservative per-step tile budget / scoped-VMEM request.  Sized for v7x's
# 64 MiB physical / 32 MiB scoped default (the tightest generation), which is
# also safely below v5e/v6e's 128 MiB physical.
_VMEM_TILE_BUDGET = 24 * 1024 * 1024
_VMEM_LIMIT_BYTES = 32 * 1024 * 1024


def _tensorcores_per_chip():
    """1 on v5e/v6e, 2 on v7x.  Defaults to 1 if detection fails."""
    try:
        dev = jax.devices()[0]
        if dev.platform != "tpu":
            return 1
        kind = dev.device_kind.lower()
    except Exception:
        return 1
    return 2 if ("v7" in kind or "7x" in kind) else 1


def _pick_graph_block(B, E, D, Hp, n_cores, *, full_graph_output):
    """Graphs per grid step.

      * 1 TensorCore (v5e/v6e): one grid step (the 2-step split buys nothing
        and adds ~0.35 us/step pipeline overhead on a sub-us kernel).
      * 2 TensorCores (v7x): split into >= n_cores "parallel" steps.
      * Cap so the per-step block (double-buffered, lane-padded) fits the
        _VMEM_TILE_BUDGET (v7x-sized).  Taking the largest fitting block also
        naturally gives M >= 256 MXU rows per step once B scales.
      * Falls back to a single step (g = B) when B has no multiple-of-8
        divisor that satisfies the split -- documented, correctness-neutral.
    """
    lane = lambda n: _round_up(n, 128)

    def step_bytes(g):
        x_b = g * E * lane(D) * 2                        # x tile, bf16
        if full_graph_output:
            a_b = g * E * lane(E) * 4                    # full adj tile, f32
            o_b = g * E * lane(Hp) * 2                   # per-node out, bf16
        else:
            a_b = g * E * lane(1) * 4                    # adj row-0 tile, f32
            o_b = g * lane(Hp) * 4                       # center-node out, f32
        return 2 * (x_b + a_b + o_b)                     # double-buffered

    fixed = D * lane(Hp) * 2 + lane(Hp) * 4              # resident W (bf16) + bias (f32)
    budget = max(_VMEM_TILE_BUDGET - 2 * fixed, 0)

    cands = sorted({d for d in range(8, B + 1, 8) if B % d == 0} | {B})
    target = B if n_cores <= 1 else max(1, B // n_cores)
    ok = [g for g in cands if g <= target and step_bytes(g) <= budget]
    return max(ok) if ok else min(cands)


# ---------------------------------------------------------------------------
# Kernels
# ---------------------------------------------------------------------------
def gcn_row0_kernel(x_ref, adj0_ref, w_ref, b_ref, o_ref):
    """Last GCN layer fused with the row-0 (center node) selection, with the
    adjacency reduction reassociated BEFORE the matmul:
        out[g] = adj0[g] @ (x[g] @ W)  ==  (adj0[g] @ x[g]) @ W

    x_ref   : (g, E, D)  bf16   node features per graph
    adj0_ref: (g, E, 1)  f32    row 0 of each graph's adjacency
    w_ref   : (D, Hp)    bf16   weight, zero-padded to lane-dense Hp
    b_ref   : (1, Hp)    f32    bias, zero-padded
    o_ref   : (g, Hp)    f32    center-node output per graph
    """
    # Center-row reduction first: VPU multiply + sublane reduce over E.
    # 8x fewer MXU rows and no (g*E, Hp) support intermediate.
    xr = jnp.sum(x_ref[...].astype(jnp.float32) * adj0_ref[...], axis=1)   # (g, D) f32

    # bf16 MXU matmul with an exact hi/lo split of xr, so the reassociation
    # does not introduce a bf16 rounding of the reduced features (the extra
    # tiny matmul is still 4x fewer MXU rows than the pre-reassociation form).
    xr_hi = xr.astype(jnp.bfloat16)
    xr_lo = (xr - xr_hi.astype(jnp.float32)).astype(jnp.bfloat16)
    w = w_ref[...]
    out = jnp.dot(xr_hi, w, preferred_element_type=jnp.float32)            # (g, Hp)
    out = out + jnp.dot(xr_lo, w, preferred_element_type=jnp.float32)
    o_ref[...] = out + b_ref[...]


def gcn_full_kernel(x_ref, adj_ref, w_ref, b_ref, o_ref):
    """Intermediate GCN layer (only used when layers > 1): full per-node output.

    x_ref : (g, E, D) bf16 ; adj_ref : (g, E, E) f32 ; w_ref : (D, Hp) bf16
    b_ref : (1, Hp)  f32   ; o_ref   : (g, E, Hp) bf16 (stays lane-padded)
    """
    g, E, D = x_ref.shape
    Hp = w_ref.shape[1]
    # One flattened MXU matmul over all g*E node rows (bf16 operands, f32 acc).
    support = jnp.dot(x_ref[...].reshape(g * E, D), w_ref[...],
                      preferred_element_type=jnp.float32).reshape(g, E, Hp)
    adj = adj_ref[...]
    # adj @ support done as E broadcast multiply-adds on the VPU: a per-graph
    # [E,E]@[E,Hp] MXU push would be <1/16 utilization at E=8.
    out = adj[:, :, 0:1] * support[:, 0:1, :]
    for f in range(1, E):
        out = out + adj[:, :, f:f + 1] * support[:, f:f + 1, :]
    o_ref[...] = (out + b_ref[...][None]).astype(o_ref.dtype)


# ---------------------------------------------------------------------------
# pallas_call wrappers
# ---------------------------------------------------------------------------
def gcn_row0(x3, adj0, w_pad, b_pad, g):
    B, E, D = x3.shape
    Hp = w_pad.shape[1]
    return pl.pallas_call(
        gcn_row0_kernel,
        out_shape=jax.ShapeDtypeStruct((B, Hp), jnp.float32),
        grid_spec=pltpu.PrefetchScalarGridSpec(
            num_scalar_prefetch=0,
            grid=(B // g,),
            in_specs=[
                pl.BlockSpec((g, E, D), lambda i: (i, 0, 0)),
                pl.BlockSpec((g, E, 1), lambda i: (i, 0, 0)),
                pl.BlockSpec((D, Hp), lambda i: (0, 0)),
                pl.BlockSpec((1, Hp), lambda i: (0, 0)),
            ],
            out_specs=pl.BlockSpec((g, Hp), lambda i: (i, 0)),
        ),
        compiler_params=pltpu.CompilerParams(
            dimension_semantics=("parallel",),
            vmem_limit_bytes=_VMEM_LIMIT_BYTES),
    )(x3, adj0, w_pad, b_pad)


def gcn_full(x3, adj, w_pad, b_pad, g):
    B, E, D = x3.shape
    Hp = w_pad.shape[1]
    return pl.pallas_call(
        gcn_full_kernel,
        out_shape=jax.ShapeDtypeStruct((B, E, Hp), jnp.bfloat16),
        grid_spec=pltpu.PrefetchScalarGridSpec(
            num_scalar_prefetch=0,
            grid=(B // g,),
            in_specs=[
                pl.BlockSpec((g, E, D), lambda i: (i, 0, 0)),
                pl.BlockSpec((g, E, E), lambda i: (i, 0, 0)),
                pl.BlockSpec((D, Hp), lambda i: (0, 0)),
                pl.BlockSpec((1, Hp), lambda i: (0, 0)),
            ],
            out_specs=pl.BlockSpec((g, E, Hp), lambda i: (i, 0, 0)),
        ),
        compiler_params=pltpu.CompilerParams(
            dimension_semantics=("parallel",),
            vmem_limit_bytes=_VMEM_LIMIT_BYTES),
    )(x3, adj, w_pad, b_pad)


# ---------------------------------------------------------------------------
# One-time parameter preparation (hoisted out of the per-call forward)
# ---------------------------------------------------------------------------
def prepare_graph_encoder_params(embedding_table, gnn_params):
    """Cast the embedding table to bf16 once and build lane-padded bf16 weights
    / f32 biases once.  Intermediate layers keep the padded Hp width between
    layers, so their W rows are padded to the previous layer's Hp."""
    emb_bf16 = embedding_table.astype(jnp.bfloat16)
    prepared = []
    din_actual = embedding_table.shape[1]     # width of the activations fed in
    for li, (w, b) in enumerate(gnn_params):
        Din, H = w.shape
        Hp = _round_up(H, 128)
        Dp = din_actual if li == 0 else _round_up(Din, 128)
        w_pad = jnp.zeros((Dp, Hp), jnp.float32).at[:Din, :H].set(w)
        b_pad = jnp.zeros((1, Hp), jnp.float32).at[:, :H].set(b.reshape(1, H))
        prepared.append((w_pad.astype(jnp.bfloat16), b_pad, H))
        din_actual = Hp                       # next layer consumes padded width
    return emb_bf16, tuple(prepared)


# ---------------------------------------------------------------------------
# GraphEncoder forward
# ---------------------------------------------------------------------------
def graph_encoder_forward(ids, adjs, emb_bf16, prepared_params):
    """
    ids : [N, L, E] int32 ; adjs: [N, L, E, E] float32
    emb_bf16: [entity, D] bf16 (pre-cast) ;
    prepared_params: tuple of (w_pad bf16 [Dp, Hp], b_pad f32 [1, Hp], H)
    returns: [N, L, H]  (center-node embedding, == GraphEncoder.forward output)
    """
    N, L, E = ids.shape
    B = N * L
    # TODO(synk): fuse this embedding gather into the kernel (scalar-prefetch
    # ids + manual DMA gather from an HBM-resident pl.ANY table) to drop the
    # HBM write+read of x; the table is pre-cast to bf16 so the gather already
    # lands in the kernel's compute dtype.
    x = emb_bf16[ids.reshape(B, E)]                         # (B, E, D) bf16
    adj = adjs.reshape(B, E, E)

    n_cores = _tensorcores_per_chip()
    n_layers = len(prepared_params)
    H_last = prepared_params[-1][2]
    out = None
    for li, (w_pad, b_pad, H) in enumerate(prepared_params):
        D = x.shape[-1]
        Hp = w_pad.shape[1]
        last = (li == n_layers - 1)
        g = _pick_graph_block(B, E, D, Hp, n_cores, full_graph_output=not last)
        if last:
            # Only adjacency row 0 (center node) is consumed downstream; the
            # wrapper-side row slice is negligible at E=8 (see review).
            adj0 = adj[:, 0, :].reshape(B, E, 1)
            out = gcn_row0(x, adj0, w_pad, b_pad, g)[:, :H]   # [B, H]
        else:
            # Stays (B, E, Hp) bf16 — no slice / re-cast between layers.
            x = gcn_full(x, adj, w_pad, b_pad, g)
    return out.reshape(N, L, H_last)


# ---------------------------------------------------------------------------
# Synthetic graph construction (stand-in for GraphConstructer's cached graphs)
# ---------------------------------------------------------------------------
def build_synthetic_graphs(key, N, L, E, entity):
    """Deterministic stand-in for GraphConstructer.get_seq_graph:
    star graph with self-loops, random neighbor ids, random #neighbors."""
    k1, k2 = jax.random.split(key)
    ids = jax.random.randint(k1, (N, L, E), minval=1, maxval=entity, dtype=jnp.int32)
    num_nb = jax.random.randint(k2, (N, L), minval=2, maxval=E + 1, dtype=jnp.int32)
    slot = jnp.arange(E, dtype=jnp.int32)
    valid = slot[None, None, :] < num_nb[:, :, None]              # [N, L, E]
    ids = jnp.where(valid, ids, 0)                                # 0 = padding id
    vf = valid.astype(jnp.float32)
    eye = jnp.eye(E, dtype=jnp.float32)
    is0 = (slot == 0).astype(jnp.float32)
    row0 = vf[:, :, None, :] * is0[None, None, :, None]           # adj[0, i] = 1
    col0 = vf[:, :, :, None] * is0[None, None, None, :]           # adj[i, 0] = 1
    diag = vf[:, :, :, None] * eye[None, None]                    # adj[i, i] = 1
    adj = jnp.clip(row0 + col0 + diag, 0.0, 1.0)
    return ids, adj


if __name__ == "__main__":
    # Small shapes consistent with the module.
    N, L, E = 2, 8, 8          # batch, max_seq_length, max_node
    entity = 64
    emb_size = 32              # D
    hiddim = 32                # H
    layers = 1

    root = jax.random.PRNGKey(0)
    k_graph, k_emb, k_w, k_b = jax.random.split(root, 4)

    # Deterministic parameter init (matches the module's init schemes).
    embedding_table = jax.random.normal(k_emb, (entity, emb_size), dtype=jnp.float32)
    gnn_params = []
    indim = emb_size
    wkeys = jax.random.split(k_w, layers)
    bkeys = jax.random.split(k_b, layers)
    for l in range(layers):
        stdv = 1.0 / math.sqrt(hiddim)
        w = jax.random.uniform(wkeys[l], (indim, hiddim), minval=-stdv, maxval=stdv,
                               dtype=jnp.float32)
        b = jax.random.uniform(bkeys[l], (hiddim,), minval=-stdv, maxval=stdv,
                               dtype=jnp.float32)
        gnn_params.append((w, b))
        indim = hiddim

    # TODO(synk): GraphConstructer reads cached pickled graphs from disk; we
    # synthesize equivalent star-graph (neighbors, adjacency) tensors in-script.
    ids, adjs = build_synthetic_graphs(k_graph, N, L, E, entity)

    # One-time prep (bf16 table, lane-padded weights) — hoisted out of forward.
    emb_bf16, prepared = prepare_graph_encoder_params(embedding_table, gnn_params)

    out = jax.block_until_ready(
        graph_encoder_forward(ids, adjs, emb_bf16, prepared))

    # Pure-JAX reference in module order (adj @ (x W)).  Operands are rounded
    # to bf16 exactly like the kernel does (accumulation stays f32), so the
    # comparison can stay tight.
    hi = jax.lax.Precision.HIGHEST
    x_ref = embedding_table[ids]                                   # [N, L, E, D]
    for (w, b) in gnn_params:
        xb = x_ref.astype(jnp.bfloat16).astype(jnp.float32)
        wb = w.astype(jnp.bfloat16).astype(jnp.float32)
        support = jnp.einsum("nled,dh->nleh", xb, wb, precision=hi)
        x_ref = jnp.einsum("nlef,nlfh->nleh", adjs, support, precision=hi) + b
    ref = x_ref[:, :, 0, :]

    assert out.shape == (N, L, hiddim)
    assert jnp.allclose(out, ref, atol=1e-3, rtol=1e-3), \
        float(jnp.max(jnp.abs(out - ref)))

    print("KERNEL_OK")
</pallas_src>

<mosaic_0001>
module attributes {stable_mosaic.version = 11 : i64} {
  func.func @gcn_row0_kernel(%arg0: i32, %arg1: memref<16x8x32xbf16, #tpu.memory_space<vmem>>, %arg2: memref<16x8x1xf32, #tpu.memory_space<vmem>>, %arg3: memref<32x128xbf16, #tpu.memory_space<vmem>>, %arg4: memref<1x128xf32, #tpu.memory_space<vmem>>, %arg5: memref<16x128xf32, #tpu.memory_space<vmem>>) attributes {dimension_semantics = [#tpu.dimension_semantics<parallel>], iteration_bounds = array<i64: 1>, scalar_prefetch = 0 : i64, scratch_operands = 0 : i64, tpu.core_type = #tpu.core_type<tc>, window_params = [{transform_indices = @transform_0, window_bounds = array<i64: 16, 8, 32>}, {transform_indices = @transform_1, window_bounds = array<i64: 16, 8, 1>}, {pipeline_mode = #tpu.pipeline_mode<synchronous>, transform_indices = @transform_2, window_bounds = array<i64: 32, 128>}, {pipeline_mode = #tpu.pipeline_mode<synchronous>, transform_indices = @transform_3, window_bounds = array<i64: 1, 128>}, {transform_indices = @transform_4, window_bounds = array<i64: 16, 128>}]} {
    %c0 = arith.constant 0 : index
    %c0_0 = arith.constant 0 : index
    %c0_1 = arith.constant 0 : index
    %0 = vector.load %arg1[%c0, %c0_0, %c0_1] : memref<16x8x32xbf16, #tpu.memory_space<vmem>>, vector<16x8x32xbf16>
    %1 = arith.extf %0 : vector<16x8x32xbf16> to vector<16x8x32xf32>
    %c0_2 = arith.constant 0 : index
    %c0_3 = arith.constant 0 : index
    %c0_4 = arith.constant 0 : index
    %2 = vector.load %arg2[%c0_2, %c0_3, %c0_4] : memref<16x8x1xf32, #tpu.memory_space<vmem>>, vector<16x8x1xf32>
    %3 = vector.broadcast %2 : vector<16x8x1xf32> to vector<16x8x32xf32>
    %4 = arith.mulf %1, %3 : vector<16x8x32xf32>
    %cst = arith.constant dense<0.000000e+00> : vector<16x32xf32>
    %5 = vector.multi_reduction <add>, %4, %cst [1] : vector<16x8x32xf32> to vector<16x32xf32>
    %6 = arith.truncf %5 : vector<16x32xf32> to vector<16x32xbf16>
    %7 = arith.extf %6 : vector<16x32xbf16> to vector<16x32xf32>
    %8 = arith.subf %5, %7 : vector<16x32xf32>
    %9 = arith.truncf %8 : vector<16x32xf32> to vector<16x32xbf16>
    %c0_5 = arith.constant 0 : index
    %c0_6 = arith.constant 0 : index
    %10 = vector.load %arg3[%c0_5, %c0_6] : memref<32x128xbf16, #tpu.memory_space<vmem>>, vector<32x128xbf16>
    %cst_7 = arith.constant dense<0.000000e+00> : vector<16x128xf32>
    %11 = tpu.matmul %6, %10, %cst_7 {dimension_numbers = #tpu.dot_dimension_numbers<[1], [0], [0], [1], [0, 0, 1, 1], [], []>} : vector<16x32xbf16>, vector<32x128xbf16>, vector<16x128xf32> -> vector<16x128xf32>
    %cst_8 = arith.constant dense<0.000000e+00> : vector<16x128xf32>
    %12 = tpu.matmul %9, %10, %cst_8 {dimension_numbers = #tpu.dot_dimension_numbers<[1], [0], [0], [1], [0, 0, 1, 1], [], []>} : vector<16x32xbf16>, vector<32x128xbf16>, vector<16x128xf32> -> vector<16x128xf32>
    %13 = arith.addf %11, %12 : vector<16x128xf32>
    %c0_9 = arith.constant 0 : index
    %c0_10 = arith.constant 0 : index
    %14 = vector.load %arg4[%c0_9, %c0_10] : memref<1x128xf32, #tpu.memory_space<vmem>>, vector<1x128xf32>
    %15 = vector.broadcast %14 : vector<1x128xf32> to vector<16x128xf32>
    %16 = arith.addf %13, %15 : vector<16x128xf32>
    %c0_11 = arith.constant 0 : index
    %c0_12 = arith.constant 0 : index
    %17 = vector.load %arg5[%c0_11, %c0_12] : memref<16x128xf32, #tpu.memory_space<vmem>>, vector<16x128xf32>
    tpu.vector_store %arg5[%c0_11, %c0_12], %16 {strides = array<i32>} : memref<16x128xf32, #tpu.memory_space<vmem>>, vector<16x128xf32>,
    return
  }
  func.func @transform_0(%arg0: i32) -> (i32, i32, i32) {
    %c0_i32 = arith.constant 0 : i32
    %c0_i32_0 = arith.constant 0 : i32
    %c0_i32_1 = arith.constant 0 : i32
    return %arg0, %c0_i32, %c0_i32_0 : i32, i32, i32
  }
  func.func @transform_1(%arg0: i32) -> (i32, i32, i32) {
    %c0_i32 = arith.constant 0 : i32
    %c0_i32_0 = arith.constant 0 : i32
    %c0_i32_1 = arith.constant 0 : i32
    return %arg0, %c0_i32, %c0_i32_0 : i32, i32, i32
  }
  func.func @transform_2(%arg0: i32) -> (i32, i32) {
    %c0_i32 = arith.constant 0 : i32
    %c0_i32_0 = arith.constant 0 : i32
    %c0_i32_1 = arith.constant 0 : i32
    return %c0_i32, %c0_i32_0 : i32, i32
  }
  func.func @transform_3(%arg0: i32) -> (i32, i32) {
    %c0_i32 = arith.constant 0 : i32
    %c0_i32_0 = arith.constant 0 : i32
    %c0_i32_1 = arith.constant 0 : i32
    return %c0_i32, %c0_i32_0 : i32, i32
  }
  func.func @transform_4(%arg0: i32) -> (i32, i32) {
    %c0_i32 = arith.constant 0 : i32
    %c0_i32_0 = arith.constant 0 : i32
    return %arg0, %c0_i32 : i32, i32
  }
}

</mosaic_0001>

<bundles_post_ra>
// kernel: tpu_custom_call.1
= control target key start
LH: loop header
LB: loop body
LE: loop exit
PB: predicated region body
PF: predicated region fallthrough
CT: control target
= control target key end

     0   :  { %v670_v2 = vmov 0   ;;  %s909_s0 = inlined_call_operand.vmem [shape: bf16[16,8,32], index: 0, kind: input, shape index: {}]   ;;  %s910_s1 = inlined_call_operand.vmem [shape: f32[16,8,1], index: 1, kind: input, shape index: {}]   ;;  %s911_s2 = inlined_call_operand.vmem [shape: bf16[32,128], index: 2, kind: input, shape index: {}]   ;;  %s912_s3 = inlined_call_operand.vmem [shape: f32[1,128], index: 3, kind: input, shape index: {}]   ;;  %s913_s4 = inlined_call_operand.hbm [shape: f32[16,128], index: 4, kind: output, shape index: {}]  }
   0x1   :  { %v59_v0 = vld [vmem:[%s910_s1 + $0x40] sm:$0xff]  ;;  %645 = vset.pattern.permute.xlu1 %v670_v2  ;;  %644 = vset.pattern.permute.xlu0 %v670_v2  ;;  %v60_v3 = vld [vmem:[%s910_s1 + $0x48] sm:$0xff]  ;;  %v61_v5 = vld [vmem:[%s910_s1 + $0x50] sm:$0xff] }
   0x2   :  { %v51_v1 = vld [vmem:[%s910_s1] sm:$0xff]  ;;  %109 = vperm.xlu1 %645, %v59_v0   ;;  %v52_v4 = vld [vmem:[%s910_s1 + $0x8] sm:$0xff]  ;;  %v53_v6 = vld [vmem:[%s910_s1 + $0x10] sm:$0xff] }
   0x3   :  { %69 = vperm.xlu0 %644, %v51_v1  }
   0x6   :  { %114 = vperm.xlu1 %645, %v60_v3  }
   0x7   :  { %74 = vperm.xlu0 %644, %v52_v4  }
   0x8   :  { %9 = vsyncpa [#allocation3], 0  ;;  %v62_v7 = vld [vmem:[%s910_s1 + $0x58] sm:$0xff]  ;;  %v63_v9 = vld [vmem:[%s910_s1 + $0x60] sm:$0xff]  ;;  %v671_v18 = vmov 0.0   ;;  %vm672_vm0 = vmmov 0  }
   0x9   :  { %v54_v8 = vld [vmem:[%s910_s1 + $0x18] sm:$0xff]  ;;  %v55_v10 = vld [vmem:[%s910_s1 + $0x20] sm:$0xff]  ;;  %v64_v11 = vld [vmem:[%s910_s1 + $0x68] sm:$0xff]  ;;  %630 = vmatprep.subr.bf16.mxu1 %v671_v18  ;;  %622 = vmatprep.subr.bf16.mxu0 %v671_v18  ;;  %vm163_vm1 = vcmask 261120   ;;  %vm376_vm2 = vcmask 1041409   ;;  %vm378_vm3 = vcmask 1042434  }
   0xa   :  { %119 = vperm.xlu1 %645, %v61_v5   ;;  %v56_v12 = vld [vmem:[%s910_s1 + $0x28] sm:$0xff]  ;;  %v65_v13 = vld [vmem:[%s910_s1 + $0x70] sm:$0xff]  ;;  %v66_v15 = vld [vmem:[%s910_s1 + $0x78] sm:$0xff]  ;;  %634 = vmatprep.mubr.msk.bf16.mxu1 %vm672_vm0, %v671_v18  ;;  %vm380_vm4 = vcmask 1043459   ;;  %vm382_vm5 = vcmask 1044484   ;;  %vm384_vm6 = vcmask 1045509  }
   0xb   :  { %79 = vperm.xlu0 %644, %v53_v6   ;;  %v57_v14 = vld [vmem:[%s910_s1 + $0x30] sm:$0xff]  ;;  %v58_v16 = vld [vmem:[%s910_s1 + $0x38] sm:$0xff]  ;;  %v646_v17 = vld [vmem:[%s911_s2 + $0x8] sm:$0xff]   ;;  %626 = vmatprep.mubr.msk.bf16.mxu0 %vm672_vm0, %v671_v18  ;;  %vm386_vm7 = vcmask 1046534   ;;  %vm388_vm8 = vcmask 1047559   ;;  %s673_s14 = smov [#allocation2]  }
   0xc   :  { %631 = vmatpush3.bf16.msra.mxu1 %v646_v17  ;;  %623 = vmatpush3.bf16.msra.mxu0 %v646_v17  ;;  %v647_v19 = vld [vmem:[%s911_s2] sm:$0xff]   ;;  %v613_v30 = vld [vmem:[%s909_s0 + $0x28] sm:$0xff]   ;;  %s561_s15 = sshll.u32 %s673_s14, 4  ;;  %s562_s15 = int_to_ptr.vmem [resolvable:$true] %s561_s15 }
   0xd   :  { %632 = vmatprep.subr.bf16.mxu1 %v671_v18  ;;  %624 = vmatprep.subr.bf16.mxu0 %v671_v18  ;;  %v612_v20 = vld [vmem:[%s909_s0 + $0x20] sm:$0xff]   ;;  %v609_v31 = vld [vmem:[%s909_s0 + $0x8] sm:$0xff]   ;;  %v599_v40 = vunpack.c.l.bf16 %v613_v30  ;;  %v600_v54 = vunpack.c.h.bf16 %v613_v30  ;;  %s648_s16 = scalar_lea.vmem %s562_s15, 256  ;;  %p653_p1 = scmp.lt.s32.totalorder %s562_s15, %s562_s15 }
   0xe   :  { %124 = vperm.xlu1 %645, %v62_v7   ;;  %v578_v21 = vld [vmem:[%s909_s0] sm:$0xff]   ;;  %v595_v22 = vunpack.c.l.bf16 %v612_v20  ;;  %v596_v28 = vunpack.c.h.bf16 %v612_v20  ;;  %v583_v41 = vunpack.c.l.bf16 %v609_v31  ;;  %v584_v55 = vunpack.c.h.bf16 %v609_v31  ;;  %p649_p0 = scmp.ne.s32.totalorder %s562_s15, %s648_s16  ;;  %p654_p2 = scmp.lt.s32.totalorder %s648_s16, %s648_s16 }
   0xf   :  { %84 = vperm.xlu0 %644, %v54_v8   ;;  %v579_v23 = vunpack.c.l.bf16 %v578_v21  ;;  %v580_v29 = vunpack.c.h.bf16 %v578_v21 }
  0x10   :  { %633 = vmatpush3.bf16.msra.mxu1 %v647_v19  ;;  %625 = vmatpush3.bf16.msra.mxu0 %v647_v19  ;;  %p655_p3 = por %p654_p2, %p653_p1 }
  0x12   :  { %129 = vperm.xlu1 %645, %v63_v9   ;;  %p656_p4 = pnand %p655_p3, %p649_p0 }
  0x13   :  { %89 = vperm.xlu0 %644, %v55_v10  }
  0x16   :  { %134 = vperm.xlu1 %645, %v64_v11  }
  0x17   :  { %94 = vperm.xlu0 %644, %v56_v12  }
  0x1a   :  { %139 = vperm.xlu1 %645, %v65_v13  }
  0x1b   :  { %99 = vperm.xlu0 %644, %v57_v14  }
  0x1e   :  { %144 = vperm.xlu1 %645, %v66_v15  }
  0x1f   :  { %104 = vperm.xlu0 %644, %v58_v16  }
  0x7d   :  { %v110_v24 = vpop.permute.xlu1 %109 }
  0x7e   :  { %v70_v25 = vpop.permute.xlu0 %69  ;;  %v155_v26 = vmul.f32 %v595_v22, %v110_v24 }
  0x7f   :  { %v147_v27 = vmul.f32 %v579_v23, %v70_v25 }
  0x80   :  { %v220_v32 = vsel %vm163_vm1, %v155_v26, 0.0 }
  0x81   :  { %v164_v33 = vsel %vm163_vm1, %v147_v27, 0.0  ;;  %v221_v34 = vrot.slane %v220_v32, 4  ;;  %v115_v36 = vpop.permute.xlu1 %114 }
  0x82   :  { %v165_v35 = vrot.slane %v164_v33, 4  ;;  %v75_v37 = vpop.permute.xlu0 %74  ;;  %v156_v38 = vmul.f32 %v596_v28, %v115_v36  ;;  %v782_v28 = vld [vmem:[%s909_s0 + $0x30] sm:$0xff]  }
  0x83   :  { %v148_v39 = vmul.f32 %v580_v29, %v75_v37  ;;  %v222_v42 = vadd.f32 %v221_v34, %v220_v32  ;;  %v788_v32 = vld [vmem:[%s909_s0 + $0x10] sm:$0xff]   ;;  %v797_v37 = vld [vmem:[%s909_s0 + $0x38] sm:$0xff]  }
  0x84   :  { %v166_v43 = vadd.f32 %v165_v35, %v164_v33  ;;  %v227_v44 = vsel %vm163_vm1, %v156_v38, 0.0 }
  0x85   :  { %v171_v45 = vsel %vm163_vm1, %v148_v39, 0.0  ;;  %v223_v46 = vrot.slane %v222_v42, 2  ;;  %v228_v48 = vrot.slane %v227_v44, 4  ;;  %v120_v50 = vpop.permute.xlu1 %119 }
  0x86   :  { %v167_v47 = vrot.slane %v166_v43, 2  ;;  %v172_v49 = vrot.slane %v171_v45, 4  ;;  %v80_v51 = vpop.permute.xlu0 %79  ;;  %v157_v52 = vmul.f32 %v599_v40, %v120_v50 }
  0x87   :  { %v149_v53 = vmul.f32 %v583_v41, %v80_v51  ;;  %v224_v56 = vadd.f32 %v223_v46, %v222_v42  ;;  %v229_v58 = vadd.f32 %v228_v48, %v227_v44  ;;  %v603_v41 = vunpack.c.l.bf16 %v782_v28  ;;  %v804_v42 = vld [vmem:[%s909_s0 + $0x18] sm:$0xff]  }
  0x88   :  { %v168_v57 = vadd.f32 %v167_v47, %v166_v43  ;;  %v173_v59 = vadd.f32 %v172_v49, %v171_v45  ;;  %v234_v60 = vsel %vm163_vm1, %v157_v52, 0.0  ;;  %v587_v45 = vunpack.c.l.bf16 %v788_v32 }
  0x89   :  { %v178_v61 = vsel %vm163_vm1, %v149_v53, 0.0  ;;  %v225_v62 = vrot.slane %v224_v56, 1  ;;  %v230_v0 = vrot.slane %v229_v58, 2  ;;  %v125_v2 = vpop.permute.xlu1 %124  ;;  %v235_v4 = vrot.slane %v234_v60, 4 }
  0x8a   :  { %v169_v63 = vrot.slane %v168_v57, 1  ;;  %v174_v1 = vrot.slane %v173_v59, 2  ;;  %v85_v3 = vpop.permute.xlu0 %84  ;;  %v179_v5 = vrot.slane %v178_v61, 4  ;;  %v158_v6 = vmul.f32 %v600_v54, %v125_v2 }
  0x8b   :  { %v150_v7 = vmul.f32 %v584_v55, %v85_v3  ;;  %v226_v8 = vadd.f32 %v225_v62, %v224_v56  ;;  %v231_v10 = vadd.f32 %v230_v0, %v229_v58  ;;  %v236_v12 = vadd.f32 %v235_v4, %v234_v60 }
  0x8c   :  { %v170_v9 = vadd.f32 %v169_v63, %v168_v57  ;;  %v175_v11 = vadd.f32 %v174_v1, %v173_v59  ;;  %v180_v13 = vadd.f32 %v179_v5, %v178_v61  ;;  %v241_v14 = vsel %vm163_vm1, %v158_v6, 0.0 }
  0x8d   :  { %v185_v15 = vsel %vm163_vm1, %v150_v7, 0.0  ;;  %v775_v16 = vpack.c.bf16 %v226_v8, %v226_v8  ;;  %v232_v17 = vrot.slane %v231_v10, 1  ;;  %v237_v19 = vrot.slane %v236_v12, 2  ;;  %v130_v49 = vpop.permute.xlu1 %129 }
  0x8e   :  { %v176_v18 = vrot.slane %v175_v11, 1  ;;  %v181_v20 = vrot.slane %v180_v13, 2  ;;  %v242_v21 = vrot.slane %v241_v14, 4  ;;  %v186_v22 = vrot.slane %v185_v15, 4  ;;  %v90_v50 = vpop.permute.xlu0 %89 }
  0x8f   :  { %v777_v23 = vpack.c.bf16 %v170_v9, %v170_v9  ;;  %v233_v24 = vadd.f32 %v232_v17, %v231_v10  ;;  %v238_v26 = vadd.f32 %v237_v19, %v236_v12  ;;  %v300_v29 = vunpack.c.l.bf16 %v775_v16 }
  0x90   :  { %v177_v25 = vadd.f32 %v176_v18, %v175_v11  ;;  %v182_v27 = vadd.f32 %v181_v20, %v180_v13  ;;  %v243_v30 = vadd.f32 %v242_v21, %v241_v14  ;;  %v187_v31 = vadd.f32 %v186_v22, %v185_v15 }
  0x91   :  { %v790_v33 = vpack.c.bf16 %v233_v24, %v233_v24  ;;  %v239_v35 = vrot.slane %v238_v26, 1  ;;  %v292_v38 = vunpack.c.l.bf16 %v777_v23  ;;  %v604_v46 = vunpack.c.h.bf16 %v782_v28  ;;  %v135_v13 = vpop.permute.xlu1 %134 }
  0x92   :  { %v792_v34 = vpack.c.bf16 %v177_v25, %v177_v25  ;;  %v183_v36 = vrot.slane %v182_v27, 1  ;;  %v244_v39 = vrot.slane %v243_v30, 2  ;;  %v188_v40 = vrot.slane %v187_v31, 2  ;;  %v95_v14 = vpop.permute.xlu0 %94 }
  0x93   :  { %v301_v43 = vunpack.c.l.bf16 %v790_v33  ;;  %v240_v47 = vadd.f32 %v239_v35, %v238_v26  ;;  %v588_v51 = vunpack.c.h.bf16 %v788_v32  ;;  %v607_v52 = vunpack.c.l.bf16 %v797_v37 }
  0x94   :  { %v293_v44 = vunpack.c.l.bf16 %v792_v34  ;;  %v184_v48 = vadd.f32 %v183_v36, %v182_v27  ;;  %v316_v53 = vsub.f32 %v226_v8, %v300_v29  ;;  %v591_v56 = vunpack.c.l.bf16 %v804_v42 }
  0x95   :  { %v317_v54 = vsub.f32 %v233_v24, %v301_v43  ;;  %v308_v57 = vsub.f32 %v170_v9, %v292_v38  ;;  %v286_v58 = vpack.c.bf16 %v240_v47, %v240_v47  ;;  %v245_v59 = vadd.f32 %v244_v39, %v243_v30 }
  0x96   :  { %v309_v55 = vsub.f32 %v177_v25, %v293_v44  ;;  %v189_v60 = vadd.f32 %v188_v40, %v187_v31  ;;  %v478_v61 = vunpack.c.l.b16 %v775_v16  ;;  %v278_v62 = vpack.c.bf16 %v184_v48, %v184_v48  ;;  %v140_v40 = vpop.permute.xlu1 %139 }
  0x97   :  { %v608_v63 = vunpack.c.h.bf16 %v797_v37  ;;  %v592_v0 = vunpack.c.h.bf16 %v804_v42  ;;  %v470_v1 = vunpack.c.l.b16 %v777_v23  ;;  %v333_v2 = vpack.c.bf16 %v317_v54, %v317_v54 }
  0x98   :  { %v159_v3 = vmul.f32 %v603_v41, %v130_v49  ;;  %v151_v4 = vmul.f32 %v587_v45, %v90_v50  ;;  %v325_v5 = vpack.c.bf16 %v309_v55, %v309_v55  ;;  %v302_v6 = vunpack.c.l.bf16 %v286_v58  ;;  %v100_v41 = vpop.permute.xlu0 %99 }
  0x99   :  { %v246_v7 = vrot.slane %v245_v59, 1  ;;  %v190_v8 = vrot.slane %v189_v60, 1  ;;  %v332_v9 = vpack.c.bf16 %v316_v53, %v316_v53  ;;  %v324_v10 = vpack.c.bf16 %v308_v57, %v308_v57 }
  0x9a   :  { %v479_v11 = vunpack.c.l.b16 %v790_v33  ;;  %v471_v12 = vunpack.c.l.b16 %v792_v34  ;;  %v480_v15 = vunpack.c.l.b16 %v286_v58  ;;  %v294_v16 = vunpack.c.l.bf16 %v278_v62 }
  0x9b   :  { %v247_v17 = vadd.f32 %v246_v7, %v245_v59  ;;  %v191_v18 = vadd.f32 %v190_v8, %v189_v60  ;;  %v369_v19 = vunpack.c.l.b16 %v333_v2  ;;  %v472_v20 = vunpack.c.l.b16 %v278_v62  ;;  %v145_v7 = vpop.permute.xlu1 %144 }
  0x9c   :  { %v248_v21 = vsel %vm163_vm1, %v159_v3, 0.0  ;;  %v192_v22 = vsel %vm163_vm1, %v151_v4, 0.0  ;;  %v361_v23 = vunpack.c.l.b16 %v325_v5  ;;  %v318_v24 = vsub.f32 %v240_v47, %v302_v6  ;;  %v105_v8 = vpop.permute.xlu0 %104 }
  0x9d   :  { %v249_v25 = vrot.slane %v248_v21, 4  ;;  %v193_v26 = vrot.slane %v192_v22, 4  ;;  %v368_v27 = vunpack.c.l.b16 %v332_v9  ;;  %v360_v28 = vunpack.c.l.b16 %v324_v10 }
  0x9e   :  { %v160_v29 = vmul.f32 %v604_v46, %v135_v13  ;;  %v152_v30 = vmul.f32 %v588_v51, %v95_v14  ;;  %v493_v31 = vsel %vm376_vm2, %v479_v11, %v478_v61  ;;  %v486_v32 = vsel %vm376_vm2, %v471_v12, %v470_v1 }
  0x9f   :  { %v823_v33 = vpack.c.bf16 %v247_v17, %v247_v17  ;;  %v825_v34 = vpack.c.bf16 %v191_v18, %v191_v18  ;;  %v828_v35 = vsel %vm378_vm3, %v480_v15, %v493_v31  ;;  %v830_v36 = vsub.f32 %v184_v48, %v294_v16 }
  0xa0   :  { %v250_v38 = vadd.f32 %v249_v25, %v248_v21  ;;  %v194_v39 = vadd.f32 %v193_v26, %v192_v22  ;;  %v833_v43 = vsel %vm376_vm2, %v369_v19, %v368_v27  ;;  %v836_v44 = vsel %vm376_vm2, %v361_v23, %v360_v28 }
  0xa1   :  { %v334_v45 = vpack.c.bf16 %v318_v24, %v318_v24  ;;  %v839_v46 = vsel %vm378_vm3, %v472_v20, %v486_v32  ;;  %v255_v50 = vsel %vm163_vm1, %v160_v29, 0.0  ;;  %v199_v48 = vsel %vm163_vm1, %v152_v30, 0.0 }
  0xa2   :  { %v251_v47 = vrot.slane %v250_v38, 2  ;;  %v195_v49 = vrot.slane %v194_v39, 2  ;;  %v303_v51 = vunpack.c.l.bf16 %v823_v33  ;;  %v295_v53 = vunpack.c.l.bf16 %v825_v34 }
  0xa3   :  { %v256_v54 = vrot.slane %v255_v50, 4  ;;  %v200_v55 = vrot.slane %v199_v48, 4  ;;  %v161_v59 = vmul.f32 %v607_v52, %v140_v40  ;;  %v153_v60 = vmul.f32 %v591_v56, %v100_v41 }
  0xa4   :  { %v252_v57 = vadd.f32 %v251_v47, %v250_v38  ;;  %v196_v58 = vadd.f32 %v195_v49, %v194_v39  ;;  %v370_v61 = vunpack.c.l.b16 %v334_v45  ;;  %v326_v62 = vpack.c.bf16 %v830_v36, %v830_v36 }
  0xa5   :  { %v257_v1 = vadd.f32 %v256_v54, %v255_v50  ;;  %v201_v2 = vadd.f32 %v200_v55, %v199_v48  ;;  %v262_v5 = vsel %vm163_vm1, %v161_v59, 0.0  ;;  %v206_v6 = vsel %vm163_vm1, %v153_v60, 0.0 }
  0xa6   :  { %v253_v3 = vrot.slane %v252_v57, 1  ;;  %v197_v4 = vrot.slane %v196_v58, 1  ;;  %v319_v9 = vsub.f32 %v247_v17, %v303_v51  ;;  %v311_v52 = vsub.f32 %v191_v18, %v295_v53 }
  0xa7   :  { %v258_v10 = vrot.slane %v257_v1, 2  ;;  %v202_v11 = vrot.slane %v201_v2, 2  ;;  %v263_v13 = vrot.slane %v262_v5, 4  ;;  %v207_v14 = vrot.slane %v206_v6, 4 }
  0xa8   :  { %v254_v56 = vadd.f32 %v253_v3, %v252_v57  ;;  %v198_v12 = vadd.f32 %v197_v4, %v196_v58  ;;  %v162_v19 = vmul.f32 %v608_v63, %v145_v7  ;;  %v154_v20 = vmul.f32 %v592_v0, %v105_v8 }
  0xa9   :  { %v259_v15 = vadd.f32 %v258_v10, %v257_v1  ;;  %v203_v16 = vadd.f32 %v202_v11, %v201_v2  ;;  %v264_v17 = vadd.f32 %v263_v13, %v262_v5  ;;  %v208_v18 = vadd.f32 %v207_v14, %v206_v6 }
  0xaa   :  { %v857_v21 = vpack.c.bf16 %v254_v56, %v254_v56  ;;  %v859_v22 = vpack.c.bf16 %v198_v12, %v198_v12  ;;  %v269_v25 = vsel %vm163_vm1, %v162_v19, 0.0  ;;  %v213_v26 = vsel %vm163_vm1, %v154_v20, 0.0 }
  0xab   :  { %v260_v23 = vrot.slane %v259_v15, 1  ;;  %v204_v24 = vrot.slane %v203_v16, 1  ;;  %v481_v27 = vunpack.c.l.b16 %v823_v33  ;;  %v473_v37 = vunpack.c.l.b16 %v825_v34 }
  0xac   :  { %v304_v63 = vunpack.c.l.bf16 %v857_v21  ;;  %v296_v42 = vunpack.c.l.bf16 %v859_v22  ;;  %v265_v29 = vrot.slane %v264_v17, 2  ;;  %v209_v30 = vrot.slane %v208_v18, 2 }
  0xad   :  { %v261_v0 = vadd.f32 %v260_v23, %v259_v15  ;;  %v205_v28 = vadd.f32 %v204_v24, %v203_v16  ;;  %v335_v31 = vpack.c.bf16 %v319_v9, %v319_v9  ;;  %v327_v32 = vpack.c.bf16 %v311_v52, %v311_v52 }
  0xae   :  { %v270_v36 = vrot.slane %v269_v25, 4  ;;  %v214_v38 = vrot.slane %v213_v26, 4  ;;  %v266_v41 = vadd.f32 %v265_v29, %v264_v17  ;;  %v210_v45 = vadd.f32 %v209_v30, %v208_v18 }
  0xaf   :  { %v289_v39 = vpack.c.bf16 %v261_v0, %v261_v0  ;;  %v281_v40 = vpack.c.bf16 %v205_v28, %v205_v28  ;;  %v320_v33 = vsub.f32 %v254_v56, %v304_v63  ;;  %v312_v47 = vsub.f32 %v198_v12, %v296_v42 }
  0xb0   :  { %v271_v34 = vadd.f32 %v270_v36, %v269_v25  ;;  %v215_v49 = vadd.f32 %v214_v38, %v213_v26  ;;  %v869_v50 = vsel %vm378_vm3, %v370_v61, %v833_v43  ;;  %v871_v48 = vunpack.c.l.b16 %v326_v62 }
  0xb1   :  { %v305_v51 = vunpack.c.l.bf16 %v289_v39  ;;  %v297_v53 = vunpack.c.l.bf16 %v281_v40  ;;  %v495_v54 = vsel %vm380_vm4, %v481_v27, %v828_v35  ;;  %v488_v55 = vsel %vm380_vm4, %v473_v37, %v839_v46 }
  0xb2   :  { %v267_v57 = vrot.slane %v266_v41, 1  ;;  %v211_v58 = vrot.slane %v210_v45, 1  ;;  %v371_v59 = vunpack.c.l.b16 %v335_v31  ;;  %v363_v60 = vunpack.c.l.b16 %v327_v32 }
  0xb3   :  { %v272_v1 = vrot.slane %v271_v34, 2  ;;  %v216_v2 = vrot.slane %v215_v49, 2  ;;  %v336_v43 = vpack.c.bf16 %v320_v33, %v320_v33  ;;  %v328_v61 = vpack.c.bf16 %v312_v47, %v312_v47 }
  0xb4   :  { %v268_v62 = vadd.f32 %v267_v57, %v266_v41  ;;  %v212_v3 = vadd.f32 %v211_v58, %v210_v45  ;;  %v321_v4 = vsub.f32 %v261_v0, %v305_v51  ;;  %v313_v5 = vsub.f32 %v205_v28, %v297_v53 }
  0xb5   :  { %v273_v6 = vadd.f32 %v272_v1, %v271_v34  ;;  %v217_v7 = vadd.f32 %v216_v2, %v215_v49  ;;  %v482_v35 = vunpack.c.l.b16 %v857_v21  ;;  %v474_v46 = vunpack.c.l.b16 %v859_v22 }
  0xb6   :  { %v290_v8 = vpack.c.bf16 %v268_v62, %v268_v62  ;;  %v282_v9 = vpack.c.bf16 %v212_v3, %v212_v3  ;;  %v483_v52 = vunpack.c.l.b16 %v289_v39  ;;  %v475_v10 = vunpack.c.l.b16 %v281_v40 }
  0xb7   :  { %v274_v11 = vrot.slane %v273_v6, 1  ;;  %v218_v56 = vrot.slane %v217_v7, 1  ;;  %v372_v12 = vunpack.c.l.b16 %v336_v43  ;;  %v364_v13 = vunpack.c.l.b16 %v328_v61 }
  0xb8   :  { %v306_v14 = vunpack.c.l.bf16 %v290_v8  ;;  %v298_v15 = vunpack.c.l.bf16 %v282_v9  ;;  %v337_v16 = vpack.c.bf16 %v321_v4, %v321_v4  ;;  %v329_v19 = vpack.c.bf16 %v313_v5, %v313_v5 }
  0xb9   :  { %v275_v20 = vadd.f32 %v274_v11, %v273_v6  ;;  %v219_v17 = vadd.f32 %v218_v56, %v217_v7  ;;  %v484_v23 = vunpack.c.l.b16 %v290_v8  ;;  %v476_v21 = vunpack.c.l.b16 %v282_v9  ;;  %v576_v7 = vld [vmem:[%s912_s3] ss:$0 sm:$0xff] }
  0xba   :  { %v322_v18 = vsub.f32 %v268_v62, %v306_v14  ;;  %v314_v24 = vsub.f32 %v212_v3, %v298_v15  ;;  %v489_v26 = vsel %vm382_vm5, %v474_v46, %v488_v55  ;;  %v496_v27 = vsel %vm382_vm5, %v482_v35, %v495_v54 }
  0xbb   :  { %v291_v25 = vpack.c.bf16 %v275_v20, %v275_v20  ;;  %v283_v22 = vpack.c.bf16 %v219_v17, %v219_v17  ;;  %v490_v42 = vsel %vm384_vm6, %v475_v10, %v489_v26  ;;  %v497_v0 = vsel %vm384_vm6, %v483_v52, %v496_v27 }
  0xbc   :  { %v338_v37 = vpack.c.bf16 %v322_v18, %v322_v18  ;;  %v330_v63 = vpack.c.bf16 %v314_v24, %v314_v24  ;;  %v373_v32 = vunpack.c.l.b16 %v337_v16  ;;  %v365_v36 = vunpack.c.l.b16 %v329_v19 }
  0xbd   :  { %v307_v28 = vunpack.c.l.bf16 %v291_v25  ;;  %v485_v29 = vunpack.c.l.b16 %v291_v25  ;;  %v299_v30 = vunpack.c.l.bf16 %v283_v22  ;;  %v477_v31 = vunpack.c.l.b16 %v283_v22 }
  0xbe   :  { %v491_v38 = vsel %vm386_vm7, %v476_v21, %v490_v42  ;;  %v498_v39 = vsel %vm386_vm7, %v484_v23, %v497_v0  ;;  %v379_v47 = vsel %vm378_vm3, %v871_v48, %v836_v44  ;;  %v374_v34 = vunpack.c.l.b16 %v338_v37 }
  0xbf   :  { %v323_v40 = vsub.f32 %v275_v20, %v307_v28  ;;  %v315_v41 = vsub.f32 %v219_v17, %v299_v30  ;;  %v492_v45 = vsel %vm388_vm8, %v477_v31, %v491_v38  ;;  %v499_v33 = vsel %vm388_vm8, %v485_v29, %v498_v39 }
  0xc0   :  { %v366_v49 = vunpack.c.l.b16 %v330_v63  ;;  %v500_v51 = vpack.c.b16 %v499_v33, %v492_v45  ;;  %v392_v53 = vsel %vm380_vm4, %v371_v59, %v869_v50  ;;  %v381_v54 = vsel %vm380_vm4, %v363_v60, %v379_v47 }
  0xc1   :  { %v339_v55 = vpack.c.bf16 %v323_v40, %v323_v40  ;;  %v331_v57 = vpack.c.bf16 %v315_v41, %v315_v41  ;;  %v393_v58 = vsel %vm382_vm5, %v372_v12, %v392_v53  ;;  %v383_v1 = vsel %vm382_vm5, %v364_v13, %v381_v54 }
  0xc2   :  { %635 = vmatmul.mubr.msk.bf16.vlgmr.msra.gmra.mxu1 %vm163_vm1, %v500_v51  ;;  %v385_v44 = vsel %vm384_vm6, %v365_v36, %v383_v1  ;;  %v394_v48 = vsel %vm384_vm6, %v373_v32, %v393_v58 }
  0xc3   :  { %v375_v2 = vunpack.c.l.b16 %v339_v55  ;;  %v367_v43 = vunpack.c.l.b16 %v331_v57  ;;  %v387_v61 = vsel %vm386_vm7, %v366_v49, %v385_v44  ;;  %v395_v50 = vsel %vm386_vm7, %v374_v34, %v394_v48 }
  0xc5   :  { %v389_v59 = vsel %vm388_vm8, %v367_v43, %v387_v61  ;;  %v396_v60 = vsel %vm388_vm8, %v375_v2, %v395_v50 }
  0xc6   :  { %v397_v62 = vpack.c.b16 %v396_v60, %v389_v59 }
  0xc8   :  { %627 = vmatmul.mubr.msk.bf16.vlgmr.msra.gmra.mxu0 %vm163_vm1, %v397_v62 }
 0x182   :  { %v538_v3 = vpop.f32.mrf.mxu1 }
 0x184   :  { %v636_v4 = vpop.f32.mrf.mxu1 }
 0x186   :  { %v541_v5 = vpop.f32.mrf.mxu1 }
 0x188   :  { %v447_v6 = vpop.f32.mrf.mxu0  ;;  %v637_v35 = vpop.f32.mrf.mxu1 }
 0x189   :  { %v539_v46 = vadd.f32 %v538_v3, %v447_v6 }
 0x18a   :  { %v628_v8 = vpop.f32.mrf.mxu0 }
 0x18b   :  { %v552_v9 = vadd.f32 %v576_v7, %v539_v46 }
 0x18c   :  { %v450_v52 = vpop.f32.mrf.mxu0 }
 0x18d   :  { %554 = vst [vmem:[#allocation2] sm:$0xff] %v552_v9  ;;  %v542_v10 = vadd.f32 %v541_v5, %v450_v52 }
 0x18e   :  { %v629_v11 = vpop.f32.mrf.mxu0 }
 0x18f   :  { %v553_v56 = vadd.f32 %v576_v7, %v542_v10 }
 0x191   :  { %555 = vst [vmem:[#allocation2 + $0x8] sm:$0xff] %v553_v56 }
 0x192   :  { %659 = shalt.err (!%p656_p4)
}
 0x193   :  { %s674_s3 = smov 128   ;;  %s675_s17 = smov 8  }
 0x194   :  { %567 = dma.vmem_to_hbm [thread:$0]  %s562_s15, 256, %s913_s4, [#allocation3], %s674_s3, %s674_s3, %s675_s17  }
 0x195   :  { %668 = dma.done.wait [#allocation3], 256  }
 0x196   :  { %669 = vsyncadd [#allocation3], 4294967040 }
 0x197   :  { %571 = vsyncpa [#allocation3], 1 }

</bundles_post_ra>
